<compile_context>
chip_gen: v7x
topology: tpu7x:2x2x1
jax: 0.10.0
libtpu: 0.0.40
codegen_flags: <defaults>
</compile_context>

<pallas_src>
import functools

import jax
import jax.numpy as jnp
from jax.experimental import pallas as pl
from jax.experimental.pallas import tpu as pltpu


def _round_up(x, m):
    return ((x + m - 1) // m) * m


# --------------------------------------------------------------------------------------
# Kernel 1: self.fc + l2_norm, tiled over batch blocks (normalization hoisted out of the
# pairwise loss loop: it is done exactly once per row).
#   out = l2_norm(relu(F.normalize(X @ W.T + b, p=2, dim=1)))
# --------------------------------------------------------------------------------------
def fc_embed_kernel(x_ref, w_ref, b_ref, out_ref):
    x = x_ref[...]
    w = w_ref[...]
    h = jax.lax.dot_general(x, w, (((1,), (1,)), ((), ())),
                            preferred_element_type=jnp.float32) + b_ref[...]
    # NormLayer: F.normalize(p=2, dim=1, eps=1e-12)
    nrm = jnp.sqrt(jnp.sum(h * h, axis=-1, keepdims=True))
    hn = h / jnp.maximum(nrm, 1e-12)
    hr = jnp.maximum(hn, 0.0)                                   # ReLU
    # torch l2_norm: x / sqrt(sum(x^2) + 1e-12)
    out_ref[...] = hr / jnp.sqrt(jnp.sum(hr * hr, axis=-1, keepdims=True) + 1e-12)


# --------------------------------------------------------------------------------------
# Kernel 2: proxy-anchor loss partials.
# grid = (class_blocks [parallel], batch_blocks [arbitrary, reduction axis last]).
# Normalized proxies and the per-class exp-sum accumulators live in VMEM scratch
# (proxy normalization hoisted to the first batch step of each class block).  On the last
# batch step we emit lane-dense (1, tc) per-class partials:
#   log(1+P_sim_sum), log(1+N_sim_sum), and a valid-proxy indicator.
# The final tiny reduction to a scalar happens in the JAX wrapper (megacore friendly).
# --------------------------------------------------------------------------------------
def proxy_anchor_loss_kernel(xn_ref, lab_ref, p_ref,
                             plog_ref, nlog_ref, valid_ref,
                             pn_scr, pos_acc, neg_acc, cnt_acc,
                             *, alpha, mrg, n_batch, n_classes, tb, tc):
    ci = pl.program_id(0)   # class block
    bj = pl.program_id(1)   # batch block (reduction)

    @pl.when(bj == 0)
    def _init():
        p = p_ref[...]
        pn_scr[...] = p / jnp.sqrt(jnp.sum(p * p, axis=-1, keepdims=True) + 1e-12)
        pos_acc[...] = jnp.zeros_like(pos_acc)
        neg_acc[...] = jnp.zeros_like(neg_acc)
        cnt_acc[...] = jnp.zeros_like(cnt_acc)

    # cosine tile via MXU, contracting the feature dim (no in-kernel transpose)
    cos = jax.lax.dot_general(xn_ref[...], pn_scr[...],
                              (((1,), (1,)), ((), ())),
                              preferred_element_type=jnp.float32)        # (tb, tc)

    col = jax.lax.broadcasted_iota(jnp.int32, (tb, tc), 1) + ci * tc
    row = jax.lax.broadcasted_iota(jnp.int32, (tb, tc), 0) + bj * tb
    in_range = jnp.logical_and(row < n_batch, col < n_classes)           # mask padding
    same = lab_ref[...] == col                                           # (tb,1) vs (tb,tc)
    pos_mask = jnp.logical_and(same, in_range)
    neg_mask = jnp.logical_and(jnp.logical_not(same), in_range)

    pos_exp = jnp.exp(-alpha * (cos - mrg))
    neg_exp = jnp.exp(alpha * (cos + mrg))

    pos_acc[...] += jnp.sum(jnp.where(pos_mask, pos_exp, 0.0), axis=0, keepdims=True)
    neg_acc[...] += jnp.sum(jnp.where(neg_mask, neg_exp, 0.0), axis=0, keepdims=True)
    cnt_acc[...] += jnp.sum(pos_mask.astype(jnp.float32), axis=0, keepdims=True)

    @pl.when(bj == pl.num_programs(1) - 1)
    def _finalize():
        ccol = jax.lax.broadcasted_iota(jnp.int32, (1, tc), 1) + ci * tc
        cvalid = ccol < n_classes
        plog_ref[...] = jnp.where(cvalid, jnp.log(1.0 + pos_acc[...]), 0.0)
        nlog_ref[...] = jnp.where(cvalid, jnp.log(1.0 + neg_acc[...]), 0.0)
        valid_ref[...] = jnp.where(jnp.logical_and(cvalid, cnt_acc[...] > 0.0), 1.0, 0.0)


@functools.partial(jax.jit, static_argnames=("mrg", "alpha", "tb", "tc"))
def proxy_anchor_loss(X, T, proxies, fc_w, fc_b, mrg=0.1, alpha=32.0, tb=128, tc=128):
    B, D = X.shape
    C, D2 = proxies.shape
    Df, De = fc_w.shape
    # Proxy_Anchor.forward requires sz_fc == sz_embed (F.linear(l2_norm(X_fc), l2_norm(P)))
    assert D == D2 == De == Df, "Proxy_Anchor forward needs sz_fc == sz_embed"

    Dp = _round_up(D, 128)          # lane-dense, MXU-friendly contraction depth
    Bp = _round_up(B, tb)
    Cp = _round_up(C, tc)

    f32 = jnp.float32
    Xp = jnp.zeros((Bp, Dp), f32).at[:B, :D].set(X.astype(f32))
    Wp = jnp.zeros((Dp, Dp), f32).at[:D, :D].set(fc_w.astype(f32))
    bp = jnp.zeros((1, Dp), f32).at[0, :D].set(fc_b.astype(f32))
    Pp = jnp.zeros((Cp, Dp), f32).at[:C, :D].set(proxies.astype(f32))
    Tp = jnp.full((Bp, 1), -1, jnp.int32).at[:B, 0].set(T.astype(jnp.int32))

    # --- kernel 1: fc -> normalize -> relu -> l2_norm, tiled over batch blocks ---
    xn = pl.pallas_call(
        fc_embed_kernel,
        out_shape=jax.ShapeDtypeStruct((Bp, Dp), f32),
        grid=(Bp // tb,),
        in_specs=[
            pl.BlockSpec((tb, Dp), lambda i: (i, 0)),
            pl.BlockSpec((Dp, Dp), lambda i: (0, 0)),
            pl.BlockSpec((1, Dp), lambda i: (0, 0)),
        ],
        out_specs=pl.BlockSpec((tb, Dp), lambda i: (i, 0)),
        compiler_params=pltpu.CompilerParams(dimension_semantics=("parallel",)),
    )(Xp, Wp, bp)

    # --- kernel 2: proxy-anchor loss partials per class block ---
    kernel = functools.partial(
        proxy_anchor_loss_kernel,
        alpha=float(alpha), mrg=float(mrg),
        n_batch=B, n_classes=C, tb=tb, tc=tc)

    cost = pl.CostEstimate(
        flops=2 * Bp * Cp * Dp,
        transcendentals=2 * Bp * Cp,
        bytes_accessed=4 * (Bp * Dp + Cp * Dp + 3 * Cp))

    plog, nlog, valid = pl.pallas_call(
        kernel,
        out_shape=(
            jax.ShapeDtypeStruct((1, Cp), f32),
            jax.ShapeDtypeStruct((1, Cp), f32),
            jax.ShapeDtypeStruct((1, Cp), f32),
        ),
        grid=(Cp // tc, Bp // tb),
        in_specs=[
            pl.BlockSpec((tb, Dp), lambda ci, bj: (bj, 0)),
            pl.BlockSpec((tb, 1), lambda ci, bj: (bj, 0)),
            pl.BlockSpec((tc, Dp), lambda ci, bj: (ci, 0)),
        ],
        out_specs=(
            pl.BlockSpec((1, tc), lambda ci, bj: (0, ci)),
            pl.BlockSpec((1, tc), lambda ci, bj: (0, ci)),
            pl.BlockSpec((1, tc), lambda ci, bj: (0, ci)),
        ),
        scratch_shapes=[
            pltpu.VMEM((tc, Dp), f32),   # normalized proxy tile
            pltpu.VMEM((1, tc), f32),    # P_sim_sum accumulator
            pltpu.VMEM((1, tc), f32),    # N_sim_sum accumulator
            pltpu.VMEM((1, tc), f32),    # positive-count accumulator
        ],
        compiler_params=pltpu.CompilerParams(
            dimension_semantics=("parallel", "arbitrary")),
        cost_estimate=cost,
    )(xn, Tp, Pp)

    num_valid = jnp.sum(valid)
    pos_term = jnp.sum(plog) / num_valid
    neg_term = jnp.sum(nlog) / C
    return pos_term + neg_term


def _reference_proxy_anchor(X, T, proxies, fc_w, fc_b, mrg=0.1, alpha=32.0):
    # plain-JAX mirror of Proxy_Anchor.forward main term (gen_loss branch excluded)
    hp = jax.lax.Precision.HIGHEST
    X = X.astype(jnp.float32)
    h = jnp.einsum("bd,fd->bf", X, fc_w, precision=hp) + fc_b[None, :]
    hn = h / jnp.maximum(jnp.sqrt(jnp.sum(h * h, axis=1, keepdims=True)), 1e-12)
    xfc = jnp.maximum(hn, 0.0)
    xn = xfc / jnp.sqrt(jnp.sum(xfc * xfc, axis=1, keepdims=True) + 1e-12)
    pn = proxies / jnp.sqrt(jnp.sum(proxies * proxies, axis=1, keepdims=True) + 1e-12)
    cos = jnp.einsum("bd,cd->bc", xn, pn, precision=hp)
    C = proxies.shape[0]
    one_hot = T[:, None] == jnp.arange(C)[None, :]
    pos_exp = jnp.exp(-alpha * (cos - mrg))
    neg_exp = jnp.exp(alpha * (cos + mrg))
    P_sim = jnp.sum(jnp.where(one_hot, pos_exp, 0.0), axis=0)
    N_sim = jnp.sum(jnp.where(~one_hot, neg_exp, 0.0), axis=0)
    num_valid = jnp.sum((jnp.sum(one_hot.astype(jnp.float32), axis=0) > 0).astype(jnp.float32))
    pos_term = jnp.sum(jnp.log(1.0 + P_sim)) / num_valid
    neg_term = jnp.sum(jnp.log(1.0 + N_sim)) / C
    return pos_term + neg_term


if __name__ == "__main__":
    key = jax.random.PRNGKey(0)
    k1, k2, k3, k4 = jax.random.split(key, 4)

    B, D, C = 16, 64, 5          # batch, sz_embed == sz_fc, nb_classes
    X = jax.random.normal(k1, (B, D), dtype=jnp.float32)
    T = jax.random.randint(k2, (B,), 0, C, dtype=jnp.int32)
    proxies = jax.random.normal(k3, (C, D), dtype=jnp.float32) * (2.0 / C) ** 0.5
    fc_w = jax.random.normal(k4, (D, D), dtype=jnp.float32) * (1.0 / D) ** 0.5
    fc_b = jnp.zeros((D,), dtype=jnp.float32)   # nn.init.constant_(bias, 0)

    # small tb so the batch-reduction (accumulator) path is exercised (grid = (1, 2))
    loss = proxy_anchor_loss(X, T, proxies, fc_w, fc_b, mrg=0.1, alpha=32.0, tb=8, tc=128)
    jax.block_until_ready(loss)

    ref = _reference_proxy_anchor(X, T, proxies, fc_w, fc_b, mrg=0.1, alpha=32.0)
    assert jnp.allclose(loss, ref, atol=1e-3, rtol=1e-3), (loss, ref)

    print("KERNEL_OK")
</pallas_src>

<mosaic_0001>
module attributes {stable_mosaic.version = 11 : i64} {
  func.func @proxy_anchor_loss_kernel(%arg0: i32, %arg1: i32, %arg2: memref<8x128xf32, #tpu.memory_space<vmem>>, %arg3: memref<8x1xi32, #tpu.memory_space<vmem>>, %arg4: memref<128x128xf32, #tpu.memory_space<vmem>>, %arg5: memref<1x128xf32, #tpu.memory_space<vmem>>, %arg6: memref<1x128xf32, #tpu.memory_space<vmem>>, %arg7: memref<1x128xf32, #tpu.memory_space<vmem>>, %arg8: memref<128x128xf32, #tpu.memory_space<vmem>>, %arg9: memref<1x128xf32, #tpu.memory_space<vmem>>, %arg10: memref<1x128xf32, #tpu.memory_space<vmem>>, %arg11: memref<1x128xf32, #tpu.memory_space<vmem>>) attributes {dimension_semantics = [#tpu.dimension_semantics<parallel>, #tpu.dimension_semantics<arbitrary>], iteration_bounds = array<i64: 1, 2>, scalar_prefetch = 0 : i64, scratch_operands = 4 : i64, tpu.core_type = #tpu.core_type<tc>, window_params = [{transform_indices = @transform_0, window_bounds = array<i64: 8, 128>}, {transform_indices = @transform_1, window_bounds = array<i64: 8, 1>}, {transform_indices = @transform_2, window_bounds = array<i64: 128, 128>}, {transform_indices = @transform_3, window_bounds = array<i64: 1, 128>}, {transform_indices = @transform_4, window_bounds = array<i64: 1, 128>}, {transform_indices = @transform_5, window_bounds = array<i64: 1, 128>}]} {
    %c0_i32 = arith.constant 0 : i32
    %0 = arith.cmpi eq, %arg1, %c0_i32 : i32
    %1 = arith.extui %0 : i1 to i32
    %c0_i32_0 = arith.constant 0 : i32
    %2 = arith.cmpi ne, %1, %c0_i32_0 : i32
    scf.if %2 {
      %c0_29 = arith.constant 0 : index
      %c0_30 = arith.constant 0 : index
      %59 = vector.load %arg4[%c0_29, %c0_30] : memref<128x128xf32, #tpu.memory_space<vmem>>, vector<128x128xf32>
      %60 = arith.mulf %59, %59 : vector<128x128xf32>
      %cst_31 = arith.constant dense<0.000000e+00> : vector<128xf32>
      %61 = vector.multi_reduction <add>, %60, %cst_31 [1] : vector<128x128xf32> to vector<128xf32>
      %62 = vector.shape_cast %61 : vector<128xf32> to vector<128x1xf32>
      %cst_32 = arith.constant 9.99999996E-13 : f32
      %63 = vector.broadcast %cst_32 : f32 to vector<128x1xf32>
      %64 = arith.addf %62, %63 : vector<128x1xf32>
      %65 = math.sqrt %64 : vector<128x1xf32>
      %66 = vector.broadcast %65 : vector<128x1xf32> to vector<128x128xf32>
      %67 = arith.divf %59, %66 : vector<128x128xf32>
      %c0_33 = arith.constant 0 : index
      %c0_34 = arith.constant 0 : index
      %68 = vector.load %arg8[%c0_33, %c0_34] : memref<128x128xf32, #tpu.memory_space<vmem>>, vector<128x128xf32>
      tpu.vector_store %arg8[%c0_33, %c0_34], %67 {strides = array<i32>} : memref<128x128xf32, #tpu.memory_space<vmem>>, vector<128x128xf32>,
      %cst_35 = arith.constant 0.000000e+00 : f32
      %69 = vector.broadcast %cst_35 : f32 to vector<1x128xf32>
      %c0_36 = arith.constant 0 : index
      %c0_37 = arith.constant 0 : index
      %70 = vector.load %arg9[%c0_36, %c0_37] : memref<1x128xf32, #tpu.memory_space<vmem>>, vector<1x128xf32>
      tpu.vector_store %arg9[%c0_36, %c0_37], %69 {strides = array<i32>} : memref<1x128xf32, #tpu.memory_space<vmem>>, vector<1x128xf32>,
      %cst_38 = arith.constant 0.000000e+00 : f32
      %71 = vector.broadcast %cst_38 : f32 to vector<1x128xf32>
      %c0_39 = arith.constant 0 : index
      %c0_40 = arith.constant 0 : index
      %72 = vector.load %arg10[%c0_39, %c0_40] : memref<1x128xf32, #tpu.memory_space<vmem>>, vector<1x128xf32>
      tpu.vector_store %arg10[%c0_39, %c0_40], %71 {strides = array<i32>} : memref<1x128xf32, #tpu.memory_space<vmem>>, vector<1x128xf32>,
      %cst_41 = arith.constant 0.000000e+00 : f32
      %73 = vector.broadcast %cst_41 : f32 to vector<1x128xf32>
      %c0_42 = arith.constant 0 : index
      %c0_43 = arith.constant 0 : index
      %74 = vector.load %arg11[%c0_42, %c0_43] : memref<1x128xf32, #tpu.memory_space<vmem>>, vector<1x128xf32>
      tpu.vector_store %arg11[%c0_42, %c0_43], %73 {strides = array<i32>} : memref<1x128xf32, #tpu.memory_space<vmem>>, vector<1x128xf32>,
    } else {
    }
    %c0 = arith.constant 0 : index
    %c0_1 = arith.constant 0 : index
    %3 = vector.load %arg2[%c0, %c0_1] : memref<8x128xf32, #tpu.memory_space<vmem>>, vector<8x128xf32>
    %c0_2 = arith.constant 0 : index
    %c0_3 = arith.constant 0 : index
    %4 = vector.load %arg8[%c0_2, %c0_3] : memref<128x128xf32, #tpu.memory_space<vmem>>, vector<128x128xf32>
    %cst = arith.constant dense<0.000000e+00> : vector<8x128xf32>
    %5 = tpu.matmul %3, %4, %cst {dimension_numbers = #tpu.dot_dimension_numbers<[1], [1], [0], [0], [0, 0, 1, 0], [], []>} : vector<8x128xf32>, vector<128x128xf32>, vector<8x128xf32> -> vector<8x128xf32>
    %6 = tpu.iota {dimensions = array<i32: 1>} : vector<8x128xi32>
    %c128_i32 = arith.constant 128 : i32
    %7 = arith.muli %arg0, %c128_i32 : i32
    %8 = vector.broadcast %7 : i32 to vector<8x128xi32>
    %9 = arith.addi %6, %8 : vector<8x128xi32>
    %10 = tpu.iota {dimensions = array<i32: 0>} : vector<8x128xi32>
    %c8_i32 = arith.constant 8 : i32
    %11 = arith.muli %arg1, %c8_i32 : i32
    %12 = vector.broadcast %11 : i32 to vector<8x128xi32>
    %13 = arith.addi %10, %12 : vector<8x128xi32>
    %c16_i32 = arith.constant 16 : i32
    %14 = vector.broadcast %c16_i32 : i32 to vector<8x128xi32>
    %15 = arith.cmpi slt, %13, %14 : vector<8x128xi32>
    %c5_i32 = arith.constant 5 : i32
    %16 = vector.broadcast %c5_i32 : i32 to vector<8x128xi32>
    %17 = arith.cmpi slt, %9, %16 : vector<8x128xi32>
    %18 = arith.andi %15, %17 : vector<8x128xi1>
    %c0_4 = arith.constant 0 : index
    %c0_5 = arith.constant 0 : index
    %19 = vector.load %arg3[%c0_4, %c0_5] : memref<8x1xi32, #tpu.memory_space<vmem>>, vector<8x1xi32>
    %20 = vector.broadcast %19 : vector<8x1xi32> to vector<8x128xi32>
    %21 = arith.cmpi eq, %20, %9 : vector<8x128xi32>
    %22 = arith.andi %21, %18 : vector<8x128xi1>
    %cst_6 = arith.constant dense<true> : vector<8x128xi1>
    %23 = arith.xori %21, %cst_6 : vector<8x128xi1>
    %24 = arith.andi %23, %18 : vector<8x128xi1>
    %cst_7 = arith.constant 1.000000e-01 : f32
    %25 = vector.broadcast %cst_7 : f32 to vector<8x128xf32>
    %26 = arith.subf %5, %25 : vector<8x128xf32>
    %cst_8 = arith.constant -3.200000e+01 : f32
    %27 = vector.broadcast %cst_8 : f32 to vector<8x128xf32>
    %28 = arith.mulf %27, %26 : vector<8x128xf32>
    %29 = math.exp %28 : vector<8x128xf32>
    %cst_9 = arith.constant 1.000000e-01 : f32
    %30 = vector.broadcast %cst_9 : f32 to vector<8x128xf32>
    %31 = arith.addf %5, %30 : vector<8x128xf32>
    %cst_10 = arith.constant 3.200000e+01 : f32
    %32 = vector.broadcast %cst_10 : f32 to vector<8x128xf32>
    %33 = arith.mulf %32, %31 : vector<8x128xf32>
    %34 = math.exp %33 : vector<8x128xf32>
    %c0_11 = arith.constant 0 : index
    %c0_12 = arith.constant 0 : index
    %35 = vector.load %arg9[%c0_11, %c0_12] : memref<1x128xf32, #tpu.memory_space<vmem>>, vector<1x128xf32>
    %cst_13 = arith.constant 0.000000e+00 : f32
    %36 = vector.broadcast %cst_13 : f32 to vector<8x128xf32>
    %37 = arith.select %22, %29, %36 : vector<8x128xi1>, vector<8x128xf32>
    %cst_14 = arith.constant dense<0.000000e+00> : vector<128xf32>
    %38 = vector.multi_reduction <add>, %37, %cst_14 [0] : vector<8x128xf32> to vector<128xf32>
    %39 = vector.shape_cast %38 : vector<128xf32> to vector<1x128xf32>
    %40 = arith.addf %35, %39 : vector<1x128xf32>
    %c0_15 = arith.constant 0 : index
    %c0_16 = arith.constant 0 : index
    %41 = vector.load %arg9[%c0_15, %c0_16] : memref<1x128xf32, #tpu.memory_space<vmem>>, vector<1x128xf32>
    tpu.vector_store %arg9[%c0_15, %c0_16], %40 {strides = array<i32>} : memref<1x128xf32, #tpu.memory_space<vmem>>, vector<1x128xf32>,
    %c0_17 = arith.constant 0 : index
    %c0_18 = arith.constant 0 : index
    %42 = vector.load %arg10[%c0_17, %c0_18] : memref<1x128xf32, #tpu.memory_space<vmem>>, vector<1x128xf32>
    %cst_19 = arith.constant 0.000000e+00 : f32
    %43 = vector.broadcast %cst_19 : f32 to vector<8x128xf32>
    %44 = arith.select %24, %34, %43 : vector<8x128xi1>, vector<8x128xf32>
    %cst_20 = arith.constant dense<0.000000e+00> : vector<128xf32>
    %45 = vector.multi_reduction <add>, %44, %cst_20 [0] : vector<8x128xf32> to vector<128xf32>
    %46 = vector.shape_cast %45 : vector<128xf32> to vector<1x128xf32>
    %47 = arith.addf %42, %46 : vector<1x128xf32>
    %c0_21 = arith.constant 0 : index
    %c0_22 = arith.constant 0 : index
    %48 = vector.load %arg10[%c0_21, %c0_22] : memref<1x128xf32, #tpu.memory_space<vmem>>, vector<1x128xf32>
    tpu.vector_store %arg10[%c0_21, %c0_22], %47 {strides = array<i32>} : memref<1x128xf32, #tpu.memory_space<vmem>>, vector<1x128xf32>,
    %c0_23 = arith.constant 0 : index
    %c0_24 = arith.constant 0 : index
    %49 = vector.load %arg11[%c0_23, %c0_24] : memref<1x128xf32, #tpu.memory_space<vmem>>, vector<1x128xf32>
    %50 = arith.extui %22 : vector<8x128xi1> to vector<8x128xi32>
    %51 = arith.sitofp %50 : vector<8x128xi32> to vector<8x128xf32>
    %cst_25 = arith.constant dense<0.000000e+00> : vector<128xf32>
    %52 = vector.multi_reduction <add>, %51, %cst_25 [0] : vector<8x128xf32> to vector<128xf32>
    %53 = vector.shape_cast %52 : vector<128xf32> to vector<1x128xf32>
    %54 = arith.addf %49, %53 : vector<1x128xf32>
    %c0_26 = arith.constant 0 : index
    %c0_27 = arith.constant 0 : index
    %55 = vector.load %arg11[%c0_26, %c0_27] : memref<1x128xf32, #tpu.memory_space<vmem>>, vector<1x128xf32>
    tpu.vector_store %arg11[%c0_26, %c0_27], %54 {strides = array<i32>} : memref<1x128xf32, #tpu.memory_space<vmem>>, vector<1x128xf32>,
    %c1_i32 = arith.constant 1 : i32
    %56 = arith.cmpi eq, %arg1, %c1_i32 : i32
    %57 = arith.extui %56 : i1 to i32
    %c0_i32_28 = arith.constant 0 : i32
    %58 = arith.cmpi ne, %57, %c0_i32_28 : i32
    scf.if %58 {
      %59 = tpu.iota {dimensions = array<i32: 1>} : vector<1x128xi32>
      %c128_i32_29 = arith.constant 128 : i32
      %60 = arith.muli %arg0, %c128_i32_29 : i32
      %61 = vector.broadcast %60 : i32 to vector<1x128xi32>
      %62 = arith.addi %59, %61 : vector<1x128xi32>
      %c5_i32_30 = arith.constant 5 : i32
      %63 = vector.broadcast %c5_i32_30 : i32 to vector<1x128xi32>
      %64 = arith.cmpi slt, %62, %63 : vector<1x128xi32>
      %c0_31 = arith.constant 0 : index
      %c0_32 = arith.constant 0 : index
      %65 = vector.load %arg9[%c0_31, %c0_32] : memref<1x128xf32, #tpu.memory_space<vmem>>, vector<1x128xf32>
      %cst_33 = arith.constant 1.000000e+00 : f32
      %66 = vector.broadcast %cst_33 : f32 to vector<1x128xf32>
      %67 = arith.addf %66, %65 : vector<1x128xf32>
      %68 = math.log %67 : vector<1x128xf32>
      %cst_34 = arith.constant 0.000000e+00 : f32
      %69 = vector.broadcast %cst_34 : f32 to vector<1x128xf32>
      %70 = arith.select %64, %68, %69 : vector<1x128xi1>, vector<1x128xf32>
      %c0_35 = arith.constant 0 : index
      %c0_36 = arith.constant 0 : index
      %71 = vector.load %arg5[%c0_35, %c0_36] : memref<1x128xf32, #tpu.memory_space<vmem>>, vector<1x128xf32>
      tpu.vector_store %arg5[%c0_35, %c0_36], %70 {strides = array<i32>} : memref<1x128xf32, #tpu.memory_space<vmem>>, vector<1x128xf32>,
      %c0_37 = arith.constant 0 : index
      %c0_38 = arith.constant 0 : index
      %72 = vector.load %arg10[%c0_37, %c0_38] : memref<1x128xf32, #tpu.memory_space<vmem>>, vector<1x128xf32>
      %cst_39 = arith.constant 1.000000e+00 : f32
      %73 = vector.broadcast %cst_39 : f32 to vector<1x128xf32>
      %74 = arith.addf %73, %72 : vector<1x128xf32>
      %75 = math.log %74 : vector<1x128xf32>
      %cst_40 = arith.constant 0.000000e+00 : f32
      %76 = vector.broadcast %cst_40 : f32 to vector<1x128xf32>
      %77 = arith.select %64, %75, %76 : vector<1x128xi1>, vector<1x128xf32>
      %c0_41 = arith.constant 0 : index
      %c0_42 = arith.constant 0 : index
      %78 = vector.load %arg6[%c0_41, %c0_42] : memref<1x128xf32, #tpu.memory_space<vmem>>, vector<1x128xf32>
      tpu.vector_store %arg6[%c0_41, %c0_42], %77 {strides = array<i32>} : memref<1x128xf32, #tpu.memory_space<vmem>>, vector<1x128xf32>,
      %c0_43 = arith.constant 0 : index
      %c0_44 = arith.constant 0 : index
      %79 = vector.load %arg11[%c0_43, %c0_44] : memref<1x128xf32, #tpu.memory_space<vmem>>, vector<1x128xf32>
      %cst_45 = arith.constant 0.000000e+00 : f32
      %80 = vector.broadcast %cst_45 : f32 to vector<1x128xf32>
      %81 = arith.cmpf ogt, %79, %80 : vector<1x128xf32>
      %82 = arith.andi %64, %81 : vector<1x128xi1>
      %cst_46 = arith.constant 1.000000e+00 : f32
      %cst_47 = arith.constant 0.000000e+00 : f32
      %83 = vector.broadcast %cst_46 : f32 to vector<1x128xf32>
      %84 = vector.broadcast %cst_47 : f32 to vector<1x128xf32>
      %85 = arith.select %82, %83, %84 : vector<1x128xi1>, vector<1x128xf32>
      %c0_48 = arith.constant 0 : index
      %c0_49 = arith.constant 0 : index
      %86 = vector.load %arg7[%c0_48, %c0_49] : memref<1x128xf32, #tpu.memory_space<vmem>>, vector<1x128xf32>
      tpu.vector_store %arg7[%c0_48, %c0_49], %85 {strides = array<i32>} : memref<1x128xf32, #tpu.memory_space<vmem>>, vector<1x128xf32>,
    } else {
    }
    return
  }
  func.func @transform_0(%arg0: i32, %arg1: i32) -> (i32, i32) {
    %c0_i32 = arith.constant 0 : i32
    %c0_i32_0 = arith.constant 0 : i32
    return %arg1, %c0_i32 : i32, i32
  }
  func.func @transform_1(%arg0: i32, %arg1: i32) -> (i32, i32) {
    %c0_i32 = arith.constant 0 : i32
    %c0_i32_0 = arith.constant 0 : i32
    return %arg1, %c0_i32 : i32, i32
  }
  func.func @transform_2(%arg0: i32, %arg1: i32) -> (i32, i32) {
    %c0_i32 = arith.constant 0 : i32
    %c0_i32_0 = arith.constant 0 : i32
    return %arg0, %c0_i32 : i32, i32
  }
  func.func @transform_3(%arg0: i32, %arg1: i32) -> (i32, i32) {
    %c0_i32 = arith.constant 0 : i32
    %c0_i32_0 = arith.constant 0 : i32
    return %c0_i32, %arg0 : i32, i32
  }
  func.func @transform_4(%arg0: i32, %arg1: i32) -> (i32, i32) {
    %c0_i32 = arith.constant 0 : i32
    %c0_i32_0 = arith.constant 0 : i32
    return %c0_i32, %arg0 : i32, i32
  }
  func.func @transform_5(%arg0: i32, %arg1: i32) -> (i32, i32) {
    %c0_i32 = arith.constant 0 : i32
    %c0_i32_0 = arith.constant 0 : i32
    return %c0_i32, %arg0 : i32, i32
  }
}

module attributes {stable_mosaic.version = 11 : i64} {
  func.func @fc_embed_kernel(%arg0: i32, %arg1: memref<8x128xf32, #tpu.memory_space<vmem>>, %arg2: memref<128x128xf32, #tpu.memory_space<vmem>>, %arg3: memref<1x128xf32, #tpu.memory_space<vmem>>, %arg4: memref<8x128xf32, #tpu.memory_space<vmem>>) attributes {dimension_semantics = [#tpu.dimension_semantics<parallel>], iteration_bounds = array<i64: 2>, scalar_prefetch = 0 : i64, scratch_operands = 0 : i64, tpu.core_type = #tpu.core_type<tc>, window_params = [{transform_indices = @transform_0, window_bounds = array<i64: 8, 128>}, {pipeline_mode = #tpu.pipeline_mode<synchronous>, transform_indices = @transform_1, window_bounds = array<i64: 128, 128>}, {pipeline_mode = #tpu.pipeline_mode<synchronous>, transform_indices = @transform_2, window_bounds = array<i64: 1, 128>}, {transform_indices = @transform_3, window_bounds = array<i64: 8, 128>}]} {
    %c0 = arith.constant 0 : index
    %c0_0 = arith.constant 0 : index
    %0 = vector.load %arg1[%c0, %c0_0] : memref<8x128xf32, #tpu.memory_space<vmem>>, vector<8x128xf32>
    %c0_1 = arith.constant 0 : index
    %c0_2 = arith.constant 0 : index
    %1 = vector.load %arg2[%c0_1, %c0_2] : memref<128x128xf32, #tpu.memory_space<vmem>>, vector<128x128xf32>
    %cst = arith.constant dense<0.000000e+00> : vector<8x128xf32>
    %2 = tpu.matmul %0, %1, %cst {dimension_numbers = #tpu.dot_dimension_numbers<[1], [1], [0], [0], [0, 0, 1, 0], [], []>} : vector<8x128xf32>, vector<128x128xf32>, vector<8x128xf32> -> vector<8x128xf32>
    %c0_3 = arith.constant 0 : index
    %c0_4 = arith.constant 0 : index
    %3 = vector.load %arg3[%c0_3, %c0_4] : memref<1x128xf32, #tpu.memory_space<vmem>>, vector<1x128xf32>
    %4 = vector.broadcast %3 : vector<1x128xf32> to vector<8x128xf32>
    %5 = arith.addf %2, %4 : vector<8x128xf32>
    %6 = arith.mulf %5, %5 : vector<8x128xf32>
    %cst_5 = arith.constant dense<0.000000e+00> : vector<8xf32>
    %7 = vector.multi_reduction <add>, %6, %cst_5 [1] : vector<8x128xf32> to vector<8xf32>
    %8 = vector.shape_cast %7 : vector<8xf32> to vector<8x1xf32>
    %9 = math.sqrt %8 : vector<8x1xf32>
    %cst_6 = arith.constant 9.99999996E-13 : f32
    %10 = vector.broadcast %cst_6 : f32 to vector<8x1xf32>
    %11 = arith.maximumf %9, %10 : vector<8x1xf32>
    %12 = vector.broadcast %11 : vector<8x1xf32> to vector<8x128xf32>
    %13 = arith.divf %5, %12 : vector<8x128xf32>
    %cst_7 = arith.constant 0.000000e+00 : f32
    %14 = vector.broadcast %cst_7 : f32 to vector<8x128xf32>
    %15 = arith.maximumf %13, %14 : vector<8x128xf32>
    %16 = arith.mulf %15, %15 : vector<8x128xf32>
    %cst_8 = arith.constant dense<0.000000e+00> : vector<8xf32>
    %17 = vector.multi_reduction <add>, %16, %cst_8 [1] : vector<8x128xf32> to vector<8xf32>
    %18 = vector.shape_cast %17 : vector<8xf32> to vector<8x1xf32>
    %cst_9 = arith.constant 9.99999996E-13 : f32
    %19 = vector.broadcast %cst_9 : f32 to vector<8x1xf32>
    %20 = arith.addf %18, %19 : vector<8x1xf32>
    %21 = math.sqrt %20 : vector<8x1xf32>
    %22 = vector.broadcast %21 : vector<8x1xf32> to vector<8x128xf32>
    %23 = arith.divf %15, %22 : vector<8x128xf32>
    %c0_10 = arith.constant 0 : index
    %c0_11 = arith.constant 0 : index
    %24 = vector.load %arg4[%c0_10, %c0_11] : memref<8x128xf32, #tpu.memory_space<vmem>>, vector<8x128xf32>
    tpu.vector_store %arg4[%c0_10, %c0_11], %23 {strides = array<i32>} : memref<8x128xf32, #tpu.memory_space<vmem>>, vector<8x128xf32>,
    return
  }
  func.func @transform_0(%arg0: i32) -> (i32, i32) {
    %c0_i32 = arith.constant 0 : i32
    %c0_i32_0 = arith.constant 0 : i32
    return %arg0, %c0_i32 : i32, i32
  }
  func.func @transform_1(%arg0: i32) -> (i32, i32) {
    %c0_i32 = arith.constant 0 : i32
    %c0_i32_0 = arith.constant 0 : i32
    %c0_i32_1 = arith.constant 0 : i32
    return %c0_i32, %c0_i32_0 : i32, i32
  }
  func.func @transform_2(%arg0: i32) -> (i32, i32) {
    %c0_i32 = arith.constant 0 : i32
    %c0_i32_0 = arith.constant 0 : i32
    %c0_i32_1 = arith.constant 0 : i32
    return %c0_i32, %c0_i32_0 : i32, i32
  }
  func.func @transform_3(%arg0: i32) -> (i32, i32) {
    %c0_i32 = arith.constant 0 : i32
    %c0_i32_0 = arith.constant 0 : i32
    return %arg0, %c0_i32 : i32, i32
  }
}

</mosaic_0001>

<bundles_post_ra>
// kernel: proxy_anchor_loss.3
= control target key start
LH: loop header
LB: loop body
LE: loop exit
PB: predicated region body
PF: predicated region fallthrough
CT: control target
= control target key end

     0   :  { %s1083_s18 = smov 0   ;;  %s1085_s19 = smov 0   ;;  %s1415_s0 = inlined_call_operand.vmem [shape: f32[16,128], index: 0, kind: input, shape index: {}]   ;;  %s1416_s1 = inlined_call_operand.vmem [shape: s32[16,1], index: 1, kind: input, shape index: {}]   ;;  %s1417_s2 = inlined_call_operand.vmem [shape: f32[128,128], index: 2, kind: input, shape index: {}]   ;;  %s1418_s3 = inlined_call_operand.vmem [shape: f32[1,128], index: 3, kind: output, shape index: {0}]   ;;  %s1419_s4 = inlined_call_operand.vmem [shape: f32[1,128], index: 4, kind: output, shape index: {1}]   ;;  %s1420_s5 = inlined_call_operand.vmem [shape: f32[1,128], index: 5, kind: output, shape index: {2}]  }
   0x1   :  { %s1087_s20 = smov 0  }
   0x2 LB: > { %s25_s21 = sadd.s32 1, %s1040_s19  ;;  %p829_p0 = scmp.ge.s32.totalorder %s1044_s20, 1  ;;  %s1044_s20 = sphi %s1087_s20, %s16_s20   ;;  %s1040_s19 = sphi %s1085_s19, %s1428_s19   ;;  %s1036_s18 = sphi %s1083_s18, %s1427_s18  }
   0x3   : > { %p26_p1 = scmp.ge.s32.totalorder %s25_s21, 2  ;;  %p223_p2 = scmp.lt.s32.totalorder %s1044_s20, 3 }
   0x5   : > { %s1430_s21 = smov (%p26_p1, %s25_s21), 0  ;;  %p224_p3 = pnand %p829_p0, %p223_p2 }
   0x6   : > { %p263_p4 = scmp.lt.s32.totalorder (!%p224_p3), %s1036_s18, 1  ;;  %p832_p5 = scmp.ne.s32.totalorder (!%p224_p3), %s1036_s18, 0 }
   0x7   : > { %227 = sbr.rel (%p224_p3) target bundleno = 562 (0x232), region = 32 }
   0xe   : > { %s264_s22 = scalar_select %p263_p4, %s1036_s18, 1 }
   0xf   : > { %289 = sbr.rel (%p832_p5) target bundleno = 226 (0xe2), region = 36  ;;  %v1119_v0 = vld [vmem:[%s1417_s2 + $0x10] sm:$0xff] (!%p832_p5)  ;;  %v1124_v1 = vld [vmem:[%s1417_s2] sm:$0xff] (!%p832_p5)  ;;  %v1129_v2 = vld [vmem:[%s1417_s2 + $0x18] sm:$0xff] (!%p832_p5)  ;;  %v1046_v32 = vmov (!%p832_p5), 0.0  }
  0x10   : > { %s830_s23 = sshll.u32 %s264_s22, 3  ;;  %v308_v3 = vmul.f32 (!%p832_p5), %v1119_v0, %v1119_v0  ;;  %v306_v4 = vmul.f32 (!%p832_p5), %v1124_v1, %v1124_v1  ;;  %v1138_v5 = vld [vmem:[%s1417_s2 + $0x8] sm:$0xff] (!%p832_p5)  ;;  %v309_v6 = vmul.f32 (!%p832_p5), %v1129_v2, %v1129_v2  ;;  %v1152_v9 = vld [vmem:[%s1417_s2 + $0x20] sm:$0xff] (!%p832_p5)  ;;  %v1161_v12 = vld [vmem:[%s1417_s2 + $0x38] sm:$0xff] (!%p832_p5)  ;;  %530 = vst [vmem:[#allocation3] sm:$0x1] (!%p832_p5), %v1046_v32 }
  0x11   : > { %s1108_s26 = scalar_lea.vmem %s1415_s0, %s830_s23  ;;  %s1113_s29 = scalar_lea.vmem %s1416_s1, %s830_s23  ;;  %v307_v7 = vmul.f32 (!%p832_p5), %v1138_v5, %v1138_v5  ;;  %v1147_v8 = vld [vmem:[%s1417_s2 + $0x28] sm:$0xff] (!%p832_p5)  ;;  %v310_v11 = vmul.f32 (!%p832_p5), %v1152_v9, %v1152_v9  ;;  %v1166_v13 = vld [vmem:[%s1417_s2 + $0x30] sm:$0xff] (!%p832_p5)  ;;  %v313_v14 = vmul.f32 (!%p832_p5), %v1161_v12, %v1161_v12  ;;  %v1180_v17 = vld [vmem:[%s1417_s2 + $0x40] sm:$0xff] (!%p832_p5)  ;;  %531 = vst [vmem:[#allocation4] sm:$0x1] (!%p832_p5), %v1046_v32 }
  0x12   : > { %326 = vadd.xlane.f32.xlu1 (!%p832_p5), %v308_v3  ;;  %322 = vadd.xlane.f32.xlu0 (!%p832_p5), %v306_v4  ;;  %v311_v10 = vmul.f32 (!%p832_p5), %v1147_v8, %v1147_v8  ;;  %v312_v15 = vmul.f32 (!%p832_p5), %v1166_v13, %v1166_v13  ;;  %v1175_v16 = vld [vmem:[%s1417_s2 + $0x48] sm:$0xff] (!%p832_p5)  ;;  %v314_v19 = vmul.f32 (!%p832_p5), %v1180_v17, %v1180_v17  ;;  %v1189_v20 = vld [vmem:[%s1417_s2 + $0x58] sm:$0xff] (!%p832_p5)  ;;  %v1194_v21 = vld [vmem:[%s1417_s2 + $0x50] sm:$0xff] (!%p832_p5) }
  0x13   : > { %v315_v18 = vmul.f32 (!%p832_p5), %v1175_v16, %v1175_v16  ;;  %v317_v22 = vmul.f32 (!%p832_p5), %v1189_v20, %v1189_v20  ;;  %v316_v23 = vmul.f32 (!%p832_p5), %v1194_v21, %v1194_v21  ;;  %v1203_v24 = vld [vmem:[%s1417_s2 + $0x68] sm:$0xff] (!%p832_p5)  ;;  %v1208_v25 = vld [vmem:[%s1417_s2 + $0x60] sm:$0xff] (!%p832_p5)  ;;  %v1217_v28 = vld [vmem:[%s1417_s2 + $0x78] sm:$0xff] (!%p832_p5)  ;;  %532 = vst [vmem:[#allocation5] sm:$0x1] (!%p832_p5), %v1046_v32 }
  0x14   : > { %v319_v26 = vmul.f32 (!%p832_p5), %v1203_v24, %v1203_v24  ;;  %v318_v27 = vmul.f32 (!%p832_p5), %v1208_v25, %v1208_v25  ;;  %v1222_v29 = vld [vmem:[%s1417_s2 + $0x70] sm:$0xff] (!%p832_p5)  ;;  %v321_v30 = vmul.f32 (!%p832_p5), %v1217_v28, %v1217_v28 }
  0x15   : > { %v320_v31 = vmul.f32 (!%p832_p5), %v1222_v29, %v1222_v29 }
  0x16   : > { %328 = vadd.xlane.f32.xlu1 %v309_v6  ;;  %324 = vadd.xlane.f32.xlu0 %v307_v7 }
  0x1a   : > { %332 = vadd.xlane.f32.xlu1 %v311_v10  ;;  %330 = vadd.xlane.f32.xlu0 %v310_v11 }
  0x1e   : > { %336 = vadd.xlane.f32.xlu1 %v313_v14  ;;  %334 = vadd.xlane.f32.xlu0 %v312_v15 }
  0x22   : > { %340 = vadd.xlane.f32.xlu1 %v315_v18  ;;  %338 = vadd.xlane.f32.xlu0 %v314_v19 }
  0x26   : > { %344 = vadd.xlane.f32.xlu1 %v317_v22  ;;  %342 = vadd.xlane.f32.xlu0 %v316_v23 }
  0x2a   : > { %348 = vadd.xlane.f32.xlu1 %v319_v26  ;;  %346 = vadd.xlane.f32.xlu0 %v318_v27 }
  0x2e   : > { %352 = vadd.xlane.f32.xlu1 %v321_v30  ;;  %350 = vadd.xlane.f32.xlu0 %v320_v31 }
  0x9f   : > { %v327_v33 = vpop.xlane.xlu1 %326  ;;  %v323_v34 = vpop.xlane.xlu0 %322 }
  0xa0   : > { %v356_v35 = vadd.f32 1e-12, %v327_v33  ;;  %v354_v36 = vadd.f32 1e-12, %v323_v34 }
  0xa2   : > { %949 = vrsqrt.f32 %v356_v35  ;;  %vm386_vm0 = vcmp.eq.f32.partialorder %v356_v35, inf  ;;  %vm388_vm1 = vcmp.eq.f32.partialorder %v356_v35, 0.0  ;;  %v389_v52 = vand.u32 2147483648, %v356_v35 }
  0xa3   : > { %951 = vrsqrt.f32 %v354_v36  ;;  %v329_v37 = vpop.xlane.xlu1 %328  ;;  %v325_v38 = vpop.xlane.xlu0 %324  ;;  %vm372_vm2 = vcmp.eq.f32.partialorder %v354_v36, inf  ;;  %vm374_vm3 = vcmp.eq.f32.partialorder %v354_v36, 0.0  ;;  %v375_v54 = vand.u32 2147483648, %v354_v36 }
  0xa4   : > { %v357_v39 = vadd.f32 1e-12, %v329_v37  ;;  %v355_v40 = vadd.f32 1e-12, %v325_v38 }
  0xa6   : > { %953 = vrsqrt.f32 %v357_v39  ;;  %vm393_vm4 = vcmp.eq.f32.partialorder %v357_v39, inf  ;;  %vm395_vm5 = vcmp.eq.f32.partialorder %v357_v39, 0.0  ;;  %v396_v56 = vand.u32 2147483648, %v357_v39 }
  0xa7   : > { %955 = vrsqrt.f32 %v355_v40  ;;  %v333_v41 = vpop.xlane.xlu1 %332  ;;  %v331_v42 = vpop.xlane.xlu0 %330  ;;  %vm379_vm6 = vcmp.eq.f32.partialorder %v355_v40, inf  ;;  %vm381_vm7 = vcmp.eq.f32.partialorder %v355_v40, 0.0  ;;  %v382_v7 = vand.u32 2147483648, %v355_v40 }
  0xa8   : > { %v1228_v43 = vadd.f32 1e-12, %v333_v41  ;;  %v1230_v44 = vadd.f32 1e-12, %v331_v42 }
  0xaa   : > { %957 = vrsqrt.f32 %v1228_v43  ;;  %vm407_vm8 = vcmp.eq.f32.partialorder %v1228_v43, inf  ;;  %vm409_vm9 = vcmp.eq.f32.partialorder %v1228_v43, 0.0  ;;  %v410_v23 = vand.u32 2147483648, %v1228_v43 }
  0xab   : > { %959 = vrsqrt.f32 %v1230_v44  ;;  %v337_v45 = vpop.xlane.xlu1 %336  ;;  %v335_v46 = vpop.xlane.xlu0 %334  ;;  %vm400_vm10 = vcmp.eq.f32.partialorder %v1230_v44, inf  ;;  %vm402_vm11 = vcmp.eq.f32.partialorder %v1230_v44, 0.0  ;;  %v403_v32 = vand.u32 2147483648, %v1230_v44 }
  0xac   : > { %v950_v47 = vpop.eup %949  ;;  %v1234_v48 = vadd.f32 1e-12, %v337_v45  ;;  %v1236_v49 = vadd.f32 1e-12, %v335_v46 }
  0xad   : > { %v952_v50 = vpop.eup %951  ;;  %v385_v51 = vmul.f32 %v950_v47, %v356_v35 }
  0xae   : > { %v371_v53 = vmul.f32 %v952_v50, %v354_v36  ;;  %961 = vrsqrt.f32 %v1234_v48  ;;  %vm421_vm12 = vcmp.eq.f32.partialorder %v1234_v48, inf  ;;  %vm423_vm13 = vcmp.eq.f32.partialorder %v1234_v48, 0.0 }
  0xaf   : > { %v387_v55 = vsel %vm386_vm0, %v356_v35, %v385_v51  ;;  %963 = vrsqrt.f32 %v1236_v49  ;;  %v341_v57 = vpop.xlane.xlu1 %340  ;;  %v339_v58 = vpop.xlane.xlu0 %338  ;;  %v424_v38 = vand.u32 2147483648, %v1234_v48  ;;  %vm414_vm14 = vcmp.eq.f32.partialorder %v1236_v49, inf }
  0xb0   : > { %v954_v59 = vpop.eup %953  ;;  %v390_v60 = vsel %vm388_vm1, %v389_v52, %v387_v55  ;;  %v373_v61 = vsel %vm372_vm2, %v354_v36, %v371_v53  ;;  %v1242_v4 = vadd.f32 1e-12, %v341_v57  ;;  %v1244_v10 = vadd.f32 1e-12, %v339_v58 }
  0xb1   : > { %v956_v62 = vpop.eup %955  ;;  %965 = vrcp.f32 %v390_v60  ;;  %v376_v63 = vsel %vm374_vm3, %v375_v54, %v373_v61  ;;  %v392_v3 = vmul.f32 %v954_v59, %v357_v39  ;;  %vm416_vm15 = vcmp.eq.f32.partialorder %v1236_v49, 0.0 }
  0xb2   : > { %967 = vrcp.f32 %v376_v63  ;;  %v378_v6 = vmul.f32 %v956_v62, %v355_v40  ;;  %vm435_vm0 = vcmp.eq.f32.partialorder %v1242_v4, inf  ;;  %vm437_vm1 = vcmp.eq.f32.partialorder %v1242_v4, 0.0 }
  0xb3   : > { %v394_v11 = vsel %vm393_vm4, %v357_v39, %v392_v3  ;;  %969 = vrsqrt.f32 %v1242_v4  ;;  %v345_v14 = vpop.xlane.xlu1 %344  ;;  %v343_v15 = vpop.xlane.xlu0 %342  ;;  %vm428_vm2 = vcmp.eq.f32.partialorder %v1244_v10, inf  ;;  %vm430_vm3 = vcmp.eq.f32.partialorder %v1244_v10, 0.0 }
  0xb4   : > { %v958_v18 = vpop.eup %957  ;;  %v397_v19 = vsel %vm395_vm5, %v396_v56, %v394_v11  ;;  %v380_v22 = vsel %vm379_vm6, %v355_v40, %v378_v6  ;;  %971 = vrsqrt.f32 %v1244_v10  ;;  %v1265_v34 = vadd.f32 1e-12, %v345_v14 }
  0xb5   : > { %v960_v26 = vpop.eup %959  ;;  %973 = vrcp.f32 %v397_v19  ;;  %v383_v27 = vsel %vm381_vm7, %v382_v7, %v380_v22  ;;  %v406_v30 = vmul.f32 %v958_v18, %v1228_v43  ;;  %v1271_v39 = vadd.f32 1e-12, %v343_v15 }
  0xb6   : > { %975 = vrcp.f32 %v383_v27  ;;  %v399_v31 = vmul.f32 %v960_v26, %v1230_v44  ;;  %v431_v7 = vand.u32 2147483648, %v1244_v10  ;;  %vm449_vm4 = vcmp.eq.f32.partialorder %v1265_v34, inf }
  0xb7   : > { %v408_v33 = vsel %vm407_vm8, %v1228_v43, %v406_v30  ;;  %v349_v40 = vpop.xlane.xlu1 %348  ;;  %v347_v41 = vpop.xlane.xlu0 %346  ;;  %v417_v43 = vand.u32 2147483648, %v1236_v49  ;;  %vm451_vm5 = vcmp.eq.f32.partialorder %v1265_v34, 0.0  ;;  %vm442_vm6 = vcmp.eq.f32.partialorder %v1271_v39, inf }
  0xb8   : > { %v962_v35 = vpop.eup %961  ;;  %v411_v36 = vsel %vm409_vm9, %v410_v23, %v408_v33  ;;  %v401_v37 = vsel %vm400_vm10, %v1230_v44, %v399_v31  ;;  %v1282_v51 = vadd.f32 1e-12, %v349_v40  ;;  %v1284_v52 = vadd.f32 1e-12, %v347_v41 }
  0xb9   : > { %v964_v42 = vpop.eup %963  ;;  %977 = vrcp.f32 %v411_v36  ;;  %v404_v45 = vsel %vm402_vm11, %v403_v32, %v401_v37  ;;  %v420_v46 = vmul.f32 %v962_v35, %v1234_v48  ;;  %v452_v31 = vand.u32 2147483648, %v1265_v34 }
  0xba   : > { %979 = vrcp.f32 %v404_v45  ;;  %v413_v47 = vmul.f32 %v964_v42, %v1236_v49  ;;  %v445_v35 = vand.u32 2147483648, %v1271_v39  ;;  %vm444_vm7 = vcmp.eq.f32.partialorder %v1271_v39, 0.0 }
  0xbb   : > { %v966_v44 = vpop.eup %965  ;;  %v422_v50 = vsel %vm421_vm12, %v1234_v48, %v420_v46  ;;  %981 = vrsqrt.f32 %v1265_v34  ;;  %v438_v48 = vand.u32 2147483648, %v1242_v4  ;;  %v351_v62 = vpop.xlane.xlu0 %350  ;;  %vm463_vm8 = vcmp.eq.f32.partialorder %v1282_v51, inf }
  0xbc   : > { %v968_v53 = vpop.eup %967  ;;  %v487_v54 = vmul.f32 %v966_v44, %v1119_v0  ;;  %v425_v55 = vsel %vm423_vm13, %v424_v38, %v422_v50  ;;  %v415_v56 = vsel %vm414_vm14, %v1236_v49, %v413_v47  ;;  %983 = vrsqrt.f32 %v1271_v39 }
  0xbd   : > { %v970_v57 = vpop.eup %969  ;;  %v483_v58 = vmul.f32 %v968_v53, %v1124_v1  ;;  %985 = vrcp.f32 %v425_v55  ;;  %v418_v59 = vsel %vm416_vm15, %v417_v43, %v415_v56  ;;  %v353_v1 = vpop.xlane.xlu1 %352  ;;  %v1308_v22 = vadd.f32 1e-12, %v351_v62 }
  0xbe   : > { %v972_v60 = vpop.eup %971  ;;  %516 = vst [vmem:[#allocation2 + $0x10] sm:$0xff] %v487_v54  ;;  %987 = vrcp.f32 %v418_v59  ;;  %v434_v61 = vmul.f32 %v970_v57, %v1242_v4  ;;  %v1306_v19 = vadd.f32 1e-12, %v353_v1  ;;  %vm465_vm9 = vcmp.eq.f32.partialorder %v1282_v51, 0.0 }
  0xbf   : > { %v974_v0 = vpop.eup %973  ;;  %514 = vst [vmem:[#allocation2] sm:$0xff] %v483_v58  ;;  %v427_v49 = vmul.f32 %v972_v60, %v1244_v10  ;;  %989 = vrsqrt.f32 %v1282_v51  ;;  %vm456_vm10 = vcmp.eq.f32.partialorder %v1284_v52, inf  ;;  %vm458_vm11 = vcmp.eq.f32.partialorder %v1284_v52, 0.0 }
  0xc0   : > { %v976_v63 = vpop.eup %975  ;;  %v489_v3 = vmul.f32 %v974_v0, %v1129_v2  ;;  %v436_v6 = vsel %vm435_vm0, %v1242_v4, %v434_v61  ;;  %991 = vrsqrt.f32 %v1284_v52  ;;  %vm477_vm12 = vcmp.eq.f32.partialorder %v1306_v19, inf }
  0xc1   : > { %v485_v11 = vmul.f32 %v976_v63, %v1138_v5  ;;  %v439_v14 = vsel %vm437_vm1, %v438_v48, %v436_v6  ;;  %v429_v15 = vsel %vm428_vm2, %v1244_v10, %v427_v49  ;;  %vm479_vm13 = vcmp.eq.f32.partialorder %v1306_v19, 0.0 }
  0xc2   : > { %517 = vst [vmem:[#allocation2 + $0x18] sm:$0xff] %v489_v3  ;;  %993 = vrcp.f32 %v439_v14  ;;  %v432_v18 = vsel %vm430_vm3, %v431_v7, %v429_v15  ;;  %vm470_vm14 = vcmp.eq.f32.partialorder %v1308_v22, inf  ;;  %vm472_vm15 = vcmp.eq.f32.partialorder %v1308_v22, 0.0 }
  0xc3   : > { %v978_v2 = vpop.eup %977  ;;  %515 = vst [vmem:[#allocation2 + $0x8] sm:$0xff] %v485_v11  ;;  %995 = vrcp.f32 %v432_v18 }
  0xc4   : > { %v980_v4 = vpop.eup %979  ;;  %v493_v23 = vmul.f32 %v978_v2, %v1147_v8  ;;  %997 = vrsqrt.f32 %v1306_v19 }
  0xc5   : > { %v982_v5 = vpop.eup %981  ;;  %v491_v26 = vmul.f32 %v980_v4, %v1152_v9  ;;  %999 = vrsqrt.f32 %v1308_v22 }
  0xc6   : > { %v984_v10 = vpop.eup %983  ;;  %519 = vst [vmem:[#allocation2 + $0x28] sm:$0xff] %v493_v23  ;;  %v448_v27 = vmul.f32 %v982_v5, %v1265_v34 }
  0xc7   : > { %v986_v30 = vpop.eup %985  ;;  %518 = vst [vmem:[#allocation2 + $0x20] sm:$0xff] %v491_v26  ;;  %v441_v8 = vmul.f32 %v984_v10, %v1271_v39 }
  0xc8   : > { %v988_v32 = vpop.eup %987  ;;  %v497_v33 = vmul.f32 %v986_v30, %v1161_v12  ;;  %v450_v9 = vsel %vm449_vm4, %v1265_v34, %v448_v27  ;;  %v466_v34 = vand.u32 2147483648, %v1282_v51 }
  0xc9   : > { %v990_v36 = vpop.eup %989  ;;  %v495_v37 = vmul.f32 %v988_v32, %v1166_v13  ;;  %v453_v38 = vsel %vm451_vm5, %v452_v31, %v450_v9  ;;  %v443_v40 = vsel %vm442_vm6, %v1271_v39, %v441_v8  ;;  %v459_v39 = vand.u32 2147483648, %v1284_v52 }
  0xca   : > { %v992_v41 = vpop.eup %991  ;;  %521 = vst [vmem:[#allocation2 + $0x38] sm:$0xff] %v497_v33  ;;  %1001 = vrcp.f32 %v453_v38  ;;  %v446_v42 = vsel %vm444_vm7, %v445_v35, %v443_v40  ;;  %v462_v12 = vmul.f32 %v990_v36, %v1282_v51 }
  0xcb   : > { %520 = vst [vmem:[#allocation2 + $0x30] sm:$0xff] %v495_v37  ;;  %1003 = vrcp.f32 %v446_v42  ;;  %v455_v45 = vmul.f32 %v992_v41, %v1284_v52 }
  0xcc   : > { %v994_v13 = vpop.eup %993  ;;  %v464_v46 = vsel %vm463_vm8, %v1282_v51, %v462_v12 }
  0xcd   : > { %v996_v47 = vpop.eup %995  ;;  %v501_v43 = vmul.f32 %v994_v13, %v1175_v16  ;;  %v467_v44 = vsel %vm465_vm9, %v466_v34, %v464_v46  ;;  %v457_v50 = vsel %vm456_vm10, %v1284_v52, %v455_v45  ;;  %v480_v16 = vand.u32 2147483648, %v1306_v19 }
  0xce   : > { %v998_v53 = vpop.eup %997  ;;  %v499_v54 = vmul.f32 %v996_v47, %v1180_v17  ;;  %1005 = vrcp.f32 %v467_v44  ;;  %v460_v55 = vsel %vm458_vm11, %v459_v39, %v457_v50  ;;  %v473_v17 = vand.u32 2147483648, %v1308_v22 }
  0xcf   : > { %v1000_v56 = vpop.eup %999  ;;  %523 = vst [vmem:[#allocation2 + $0x48] sm:$0xff] %v501_v43  ;;  %1007 = vrcp.f32 %v460_v55  ;;  %v476_v51 = vmul.f32 %v998_v53, %v1306_v19 }
  0xd0   : > { %522 = vst [vmem:[#allocation2 + $0x40] sm:$0xff] %v499_v54  ;;  %v469_v57 = vmul.f32 %v1000_v56, %v1308_v22 }
  0xd1   : > { %v478_v58 = vsel %vm477_vm12, %v1306_v19, %v476_v51 }
  0xd2   : > { %v481_v52 = vsel %vm479_vm13, %v480_v16, %v478_v58  ;;  %v471_v59 = vsel %vm470_vm14, %v1308_v22, %v469_v57 }
  0xd3   : > { %1009 = vrcp.f32 %v481_v52  ;;  %v474_v60 = vsel %vm472_vm15, %v473_v17, %v471_v59 }
  0xd4   : > { %v1002_v61 = vpop.eup %1001  ;;  %1011 = vrcp.f32 %v474_v60 }
  0xd5   : > { %v1004_v0 = vpop.eup %1003  ;;  %v505_v48 = vmul.f32 %v1002_v61, %v1189_v20 }
  0xd6   : > { %v503_v49 = vmul.f32 %v1004_v0, %v1194_v21 }
  0xd7   : > { %525 = vst [vmem:[#allocation2 + $0x58] sm:$0xff] %v505_v48 }
  0xd8   : > { %v1006_v1 = vpop.eup %1005  ;;  %524 = vst [vmem:[#allocation2 + $0x50] sm:$0xff] %v503_v49 }
  0xd9   : > { %v1008_v62 = vpop.eup %1007  ;;  %v509_v63 = vmul.f32 %v1006_v1, %v1203_v24 }
  0xda   : > { %v507_v3 = vmul.f32 %v1008_v62, %v1208_v25 }
  0xdb   : > { %527 = vst [vmem:[#allocation2 + $0x68] sm:$0xff] %v509_v63 }
  0xdc   : > { %526 = vst [vmem:[#allocation2 + $0x60] sm:$0xff] %v507_v3 }
  0xdd   : > { %v1010_v6 = vpop.eup %1009 }
  0xde   : > { %v1012_v7 = vpop.eup %1011  ;;  %v513_v11 = vmul.f32 %v1010_v6, %v1217_v28 }
  0xdf   : > { %v511_v14 = vmul.f32 %v1012_v7, %v1222_v29 }
  0xe0   : > { %529 = vst [vmem:[#allocation2 + $0x78] sm:$0xff] %v513_v11 }
  0xe1   : > { %528 = vst [vmem:[#allocation2 + $0x70] sm:$0xff] %v511_v14 }
  0xe2 PF: > { %v534_v20 = vld [vmem:[#allocation2] sm:$0xff]  ;;  %v535_v21 = vld [vmem:[#allocation2 + $0x8] sm:$0xff]  ;;  %v1047_v15 = vmov 0.0|0.0   ;;  %vm1048_vm0 = vmmov 0   ;;  %v1049_v24 = vmov 0.0   ;;  %v1050_v25 = vmov 0  }
  0xe3   : > { %894 = vmatprep.subr.bf16.mxu0 %v1047_v15  ;;  %v895_v18 = vpack.c.bf16 %v535_v21, %v534_v20  ;;  %891 = vmatprep.mubr.msk.f32.mxu0 %vm1048_vm0, %v1049_v24  ;;  %v536_v19 = vld [vmem:[#allocation2 + $0x10] sm:$0xff]  ;;  %v537_v28 = vld [vmem:[#allocation2 + $0x18] sm:$0xff]  ;;  %v633_v22 = vld [vmem:[%s1113_s29] sm:$0xff]  ;;  %v620_v42 = vlaneseq  ;;  %s833_s29 = sshll.u32 %s1036_s18, 3  ;;  %vm1051_vm6 = vmmov 1   ;;  %p836_p6 = scmp.ne.s32.totalorder %s1036_s18, 1 }
  0xe4   : > { %1013 = vset.pattern.permute.xlu0 %v1050_v25  ;;  %v898_v29 = vpack.c.bf16 %v537_v28, %v536_v19  ;;  %v538_v2 = vld [vmem:[#allocation2 + $0x20] sm:$0xff]  ;;  %v539_v4 = vld [vmem:[#allocation2 + $0x28] sm:$0xff]  ;;  %v540_v5 = vld [vmem:[#allocation2 + $0x30] sm:$0xff]  ;;  %v628_v34 = vstv %s833_s29 }
  0xe5   : > { %896 = vmatpush3.bf16.xpose.msra.mxu0 %v895_v18  ;;  %635 = vperm.xlu0 %1013, %v633_v22   ;;  %v901_v23 = vpack.c.bf16 %v539_v4, %v538_v2  ;;  %v541_v26 = vld [vmem:[#allocation2 + $0x38] sm:$0xff]  ;;  %v542_v27 = vld [vmem:[#allocation2 + $0x40] sm:$0xff]  ;;  %v543_v30 = vld [vmem:[#allocation2 + $0x48] sm:$0xff]  ;;  %v626_v12 = vshrl.u32 %v620_v42, 7  ;;  %v1357_v45 = vand.u32 127, %v620_v42 }
  0xe6   : > { %897 = vmatprep.subr.bf16.mxu0 %v1047_v15  ;;  %v904_v10 = vpack.c.bf16 %v541_v26, %v540_v5  ;;  %v907_v31 = vpack.c.bf16 %v543_v30, %v542_v27  ;;  %v544_v8 = vld [vmem:[#allocation2 + $0x50] sm:$0xff]  ;;  %v545_v32 = vld [vmem:[#allocation2 + $0x58] sm:$0xff]  ;;  %v546_v9 = vld [vmem:[#allocation2 + $0x60] sm:$0xff]  ;;  %v1052_v27 = vmov (!%p836_p6), 0.0  }
  0xe7   : > { %v910_v33 = vpack.c.bf16 %v545_v32, %v544_v8  ;;  %v547_v35 = vld [vmem:[#allocation2 + $0x68] sm:$0xff]  ;;  %v549_v38 = vld [vmem:[#allocation2 + $0x78] sm:$0xff]  ;;  %v533_v41 = vld [vmem:[%s1108_s26] sm:$0xff]  ;;  %v629_v13 = vadd.s32 %v628_v34, %v626_v12  ;;  %vm631_vm2 = vcmp.lt.s32.totalorder %v1357_v45, 5 }
  0xe8   : > { %v913_v36 = vpack.c.bf16 %v547_v35, %v546_v9  ;;  %v548_v37 = vld [vmem:[#allocation2 + $0x70] sm:$0xff]  ;;  %v669_v51 = vld [vmem:[#allocation5] sm:$0x1]  ;;  %v659_v19 = vld [vmem:[#allocation4] sm:$0x1] }
  0xe9   : > { %v916_v40 = vpack.c.bf16 %v549_v38, %v548_v37  ;;  %vm630_vm1 = vcmp.lt.s32.totalorder %v629_v13, 16 }
  0xea   : > { %vm1363_vm4 = vmand %vm630_vm1, %vm631_vm2 }
  0xed   : > { %899 = vmatpush3.bf16.xpose.msra.mxu0 %v898_v29 }
  0xee   : > { %900 = vmatprep.subr.bf16.mxu0 %v1047_v15 }
  0xf5   : > { %902 = vmatpush3.bf16.xpose.msra.mxu0 %v901_v23 }
  0xf6   : > { %903 = vmatprep.subr.bf16.mxu0 %v1047_v15 }
  0xfd   : > { %905 = vmatpush3.bf16.xpose.msra.mxu0 %v904_v10 }
  0xfe   : > { %906 = vmatprep.subr.bf16.mxu0 %v1047_v15 }
 0x105   : > { %908 = vmatpush3.bf16.xpose.msra.mxu0 %v907_v31 }
 0x106   : > { %909 = vmatprep.subr.bf16.mxu0 %v1047_v15 }
 0x10d   : > { %911 = vmatpush3.bf16.xpose.msra.mxu0 %v910_v33 }
 0x10e   : > { %912 = vmatprep.subr.bf16.mxu0 %v1047_v15 }
 0x115   : > { %914 = vmatpush3.bf16.xpose.msra.mxu0 %v913_v36 }
 0x116   : > { %915 = vmatprep.subr.bf16.mxu0 %v1047_v15 }
 0x11d   : > { %917 = vmatpush3.bf16.xpose.msra.mxu0 %v916_v40 }
 0x124   : > { %892 = vmatmul.mubr.f32.vlgmr.msra.gmra.mrb[0].mxu0 %v533_v41 }
 0x164   : > { %v636_v46 = vpop.permute.xlu0 %635 }
 0x165   : > { %vm637_vm3 = vcmp.eq.s32.totalorder %v636_v46, %v1357_v45 }
 0x166   : > { %vm1369_vm5 = vmand %vm637_vm3, %vm1363_vm4 }
 0x167   : > { %vm1373_vm7 = vmxor %vm637_vm3, %vm1051_vm6  ;;  %v835_v44 = vsel %vm1369_vm5, 1.0, %v1049_v24  ;;  %v649_v24 = vld [vmem:[#allocation3] sm:$0x1] }
 0x168   : > { %vm640_vm8 = vmand %vm1373_vm7, %vm1363_vm4  ;;  %v672_v50 = vrot.slane %v835_v44, 4 }
 0x16a   : > { %v673_v53 = vadd.f32 %v835_v44, %v672_v50 }
 0x16c   : > { %v674_v54 = vrot.slane %v673_v53, 2 }
 0x16e   : > { %v675_v55 = vadd.f32 %v674_v54, %v673_v53 }
 0x170   : > { %v676_v56 = vrot.slane %v675_v55, 1 }
 0x172   : > { %v677_v16 = vadd.f32 %v676_v56, %v675_v55 }
 0x174   : > { %v678_v57 = vadd.f32 %v677_v16, %v669_v51 }
 0x176   : > { %679 = vst [vmem:[#allocation5] sm:$0x1] %v678_v57 }
 0x17d   : > { %v696_v5 = vld [vmem:[#allocation5] sm:$0x1] (!%p836_p6) }
 0x17e   : > { %vm697_vm9 = vcmp.gt.f32.partialorder (!%p836_p6), %v696_v5, 0.0 }
 0x17f   : > { %vm698_vm10 = vmand (!%p836_p6), %vm631_vm2, %vm697_vm9 }
 0x180   : > { %v699_v30 = vsel (!%p836_p6), %vm698_vm10, 1.0, %v1052_v27 }
 0x181   : > { %700 = vst [vmem:[%s1420_s5] sm:$0x1] (!%p836_p6), %v699_v30 }
 0x1f7   : > { %v616_v58 = vpop.f32.mrb[0].mxu0 }
 0x1f8   : > { %v834_v17 = vadd.f32 -0.1, %v616_v58  ;;  %v645_v52 = vadd.f32 0.1, %v616_v58  ;;  %v893_v59 = vpop.f32.mrb[1].mxu0 }
 0x1fa   : > { %v642_v60 = vmul.f32 -32.0, %v834_v17  ;;  %v646_v61 = vmul.f32 32.0, %v645_v52 }
 0x1fc   : > { %v643_v0 = vmul.f32 1.442695, %v642_v60  ;;  %v647_v48 = vmul.f32 1.442695, %v646_v61 }
 0x1fe   : > { %1014 = vpow2.f32 %v643_v0 }
 0x1ff   : > { %1016 = vpow2.f32 %v647_v48 }
 0x208   : > { %v1015_v49 = vpop.eup %1014 }
 0x209   : > { %v1017_v1 = vpop.eup %1016  ;;  %v650_v62 = vsel %vm1369_vm5, %v1015_v49, 0.0 }
 0x20a   : > { %v651_v63 = vrot.slane %v650_v62, 4  ;;  %v660_v3 = vsel %vm640_vm8, %v1017_v1, 0.0 }
 0x20b   : > { %v661_v6 = vrot.slane %v660_v3, 4 }
 0x20c   : > { %v652_v7 = vadd.f32 %v651_v63, %v650_v62 }
 0x20d   : > { %v662_v11 = vadd.f32 %v661_v6, %v660_v3 }
 0x20e   : > { %v653_v14 = vrot.slane %v652_v7, 2 }
 0x20f   : > { %v663_v20 = vrot.slane %v662_v11, 2 }
 0x210   : > { %v654_v21 = vadd.f32 %v653_v14, %v652_v7 }
 0x211   : > { %v664_v15 = vadd.f32 %v663_v20, %v662_v11 }
 0x212   : > { %v655_v18 = vrot.slane %v654_v21, 1 }
 0x213   : > { %v665_v25 = vrot.slane %v664_v15, 1  ;;  %683 = sbr.rel (%p836_p6) target bundleno = 562 (0x232), region = 40 }
 0x214   : > { %v656_v28 = vadd.f32 %v655_v18, %v654_v21 }
 0x215   : > { %v666_v22 = vadd.f32 %v665_v25, %v664_v15 }
 0x216   : > { %v657_v29 = vadd.f32 %v656_v28, %v649_v24 }
 0x217   : > { %v667_v2 = vadd.f32 %v666_v22, %v659_v19 }
 0x218   : > { %658 = vst [vmem:[#allocation3] sm:$0x1] %v657_v29 }
 0x219   : > { %668 = vst [vmem:[#allocation4] sm:$0x1] %v667_v2 }
 0x21f   : > { %v684_v4 = vld [vmem:[#allocation3] sm:$0x1] }
 0x220   : > { %v690_v23 = vld [vmem:[#allocation4] sm:$0x1]  ;;  %v685_v26 = vadd.f32 1.0, %v684_v4 }
 0x221   : > { %v691_v10 = vadd.f32 1.0, %v690_v23 }
 0x222   : > { %1018 = vlog2.f32 %v685_v26 }
 0x223   : > { %1020 = vlog2.f32 %v691_v10 }
 0x22c   : > { %v1019_v31 = vpop.eup %1018 }
 0x22d   : > { %v1021_v8 = vpop.eup %1020  ;;  %v687_v32 = vmul.f32 0.6931472, %v1019_v31 }
 0x22e   : > { %v693_v33 = vmul.f32 0.6931472, %v1021_v8 }
 0x22f   : > { %v688_v9 = vsel %vm631_vm2, %v687_v32, 0.0 }
 0x230   : > { %689 = vst [vmem:[%s1418_s3] sm:$0x1] %v688_v9  ;;  %v694_v35 = vsel %vm631_vm2, %v693_v33, 0.0 }
 0x231   : > { %695 = vst [vmem:[%s1419_s4] sm:$0x1] %v694_v35 }
 0x232 PF: > { %s16_s20 = sadd.s32 1, %s1044_s20   ;;  %s1427_s18 = smov %s1040_s19 }
 0x233   : > { %p13_p7 = scmp.ge.s32.totalorder %s16_s20, 4   ;;  %s1428_s19 = smov %s1430_s21 }
 0x235   :  { %15 = sbr.rel (!%p13_p7) target bundleno = 2 (0x2), region = 100 }

// kernel: proxy_anchor_loss.2
= control target key start
LH: loop header
LB: loop body
LE: loop exit
PB: predicated region body
PF: predicated region fallthrough
CT: control target
= control target key end

     0   :  { %s477_s12 = smov 0   ;;  %s556_s0 = inlined_call_operand.vmem [shape: f32[16,128], index: 0, kind: input, shape index: {}]   ;;  %s557_s1 = inlined_call_operand.vmem [shape: f32[128,128], index: 1, kind: input, shape index: {}]   ;;  %s558_s2 = inlined_call_operand.vmem [shape: f32[1,128], index: 2, kind: input, shape index: {}]   ;;  %s559_s3 = inlined_call_operand.vmem [shape: f32[16,128], index: 3, kind: output, shape index: {}]  }
   0x1 LB: > { %s341_s13 = sadd.s32 4294967295, %s452_s12   ;;  %p345_p0 = scmp.ge.s32.totalorder %s452_s12, 1  ;;  %s452_s12 = sphi %s477_s12, %s13_s12  }
   0x2   : > { %p136_p1 = scmp.lt.s32.totalorder %s452_s12, 3 }
   0x4   : > { %p137_p2 = pnand %p345_p0, %p136_p1 }
   0x5   : > { %v167_v0 = vld [vmem:[%s557_s1] sm:$0xff] (!%p137_p2)  ;;  %v168_v1 = vld [vmem:[%s557_s1 + $0x8] sm:$0xff] (!%p137_p2)  ;;  %v454_v2 = vmov (!%p137_p2), 0.0|0.0   ;;  %vm455_vm0 = vmmov (!%p137_p2), 0   ;;  %v456_v4 = vmov (!%p137_p2), 0.0   ;;  %v169_v5 = vld [vmem:[%s557_s1 + $0x10] sm:$0xff] (!%p137_p2) }
   0x6   : > { %140 = sbr.rel (%p137_p2) target bundleno = 636 (0x27c), region = 32  ;;  %403 = vmatprep.subr.bf16.mxu0 (!%p137_p2), %v454_v2  ;;  %v404_v3 = vpack.c.bf16 (!%p137_p2), %v168_v1, %v167_v0  ;;  %400 = vmatprep.mubr.msk.f32.mxu0 (!%p137_p2), %vm455_vm0, %v456_v4  ;;  %v170_v6 = vld [vmem:[%s557_s1 + $0x18] sm:$0xff] (!%p137_p2)  ;;  %v171_v8 = vld [vmem:[%s557_s1 + $0x20] sm:$0xff] (!%p137_p2)  ;;  %v172_v9 = vld [vmem:[%s557_s1 + $0x28] sm:$0xff] (!%p137_p2)  ;;  %p158_p3 = scmp.lt.s32.totalorder (!%p137_p2), %s341_s13, 1 }
   0x7   : > { %v407_v7 = vpack.c.bf16 (!%p137_p2), %v170_v6, %v169_v5  ;;  %v410_v10 = vpack.c.bf16 (!%p137_p2), %v172_v9, %v171_v8  ;;  %v173_v11 = vld [vmem:[%s557_s1 + $0x30] sm:$0xff] (!%p137_p2)  ;;  %v174_v12 = vld [vmem:[%s557_s1 + $0x38] sm:$0xff] (!%p137_p2)  ;;  %v175_v14 = vld [vmem:[%s557_s1 + $0x40] sm:$0xff] (!%p137_p2) }
   0x8   : > { %405 = vmatpush3.bf16.xpose.msra.mxu0 (!%p137_p2), %v404_v3  ;;  %v413_v13 = vpack.c.bf16 (!%p137_p2), %v174_v12, %v173_v11  ;;  %v176_v15 = vld [vmem:[%s557_s1 + $0x48] sm:$0xff] (!%p137_p2)  ;;  %v177_v17 = vld [vmem:[%s557_s1 + $0x50] sm:$0xff] (!%p137_p2)  ;;  %v178_v18 = vld [vmem:[%s557_s1 + $0x58] sm:$0xff] (!%p137_p2) }
   0x9   : > { %406 = vmatprep.subr.bf16.mxu0 (!%p137_p2), %v454_v2  ;;  %v416_v16 = vpack.c.bf16 (!%p137_p2), %v176_v15, %v175_v14  ;;  %v419_v19 = vpack.c.bf16 (!%p137_p2), %v178_v18, %v177_v17  ;;  %v179_v20 = vld [vmem:[%s557_s1 + $0x60] sm:$0xff] (!%p137_p2)  ;;  %v180_v21 = vld [vmem:[%s557_s1 + $0x68] sm:$0xff] (!%p137_p2)  ;;  %v181_v23 = vld [vmem:[%s557_s1 + $0x70] sm:$0xff] (!%p137_p2) }
   0xa   : > { %v422_v22 = vpack.c.bf16 (!%p137_p2), %v180_v21, %v179_v20  ;;  %v182_v24 = vld [vmem:[%s557_s1 + $0x78] sm:$0xff] (!%p137_p2)  ;;  %v348_v27 = vld [vmem:[%s558_s2] ss:$0 sm:$0xff] (!%p137_p2) }
   0xb   : > { %v425_v25 = vpack.c.bf16 (!%p137_p2), %v182_v24, %v181_v23 }
   0xd   : > { %s561_s13 = smov (!%p158_p3, %s341_s13), 1 }
   0xe   : > { %s346_s21 = sshll.u32 %s561_s13, 3 }
   0xf   : > { %s161_s24 = scalar_lea.vmem %s556_s0, %s346_s21  ;;  %s165_s29 = scalar_lea.vmem %s559_s3, %s346_s21 }
  0x10   : > { %408 = vmatpush3.bf16.xpose.msra.mxu0 %v407_v7  ;;  %v166_v26 = vld [vmem:[%s161_s24] sm:$0xff] }
  0x11   : > { %409 = vmatprep.subr.bf16.mxu0 %v454_v2 }
  0x18   : > { %411 = vmatpush3.bf16.xpose.msra.mxu0 %v410_v10 }
  0x19   : > { %412 = vmatprep.subr.bf16.mxu0 %v454_v2 }
  0x20   : > { %414 = vmatpush3.bf16.xpose.msra.mxu0 %v413_v13 }
  0x21   : > { %415 = vmatprep.subr.bf16.mxu0 %v454_v2 }
  0x28   : > { %417 = vmatpush3.bf16.xpose.msra.mxu0 %v416_v16 }
  0x29   : > { %418 = vmatprep.subr.bf16.mxu0 %v454_v2 }
  0x30   : > { %420 = vmatpush3.bf16.xpose.msra.mxu0 %v419_v19 }
  0x31   : > { %421 = vmatprep.subr.bf16.mxu0 %v454_v2 }
  0x38   : > { %423 = vmatpush3.bf16.xpose.msra.mxu0 %v422_v22 }
  0x39   : > { %424 = vmatprep.subr.bf16.mxu0 %v454_v2 }
  0x40   : > { %426 = vmatpush3.bf16.xpose.msra.mxu0 %v425_v25 }
  0x47   : > { %401 = vmatmul.mubr.f32.vlgmr.msra.gmra.mrb[0].mxu0 %v166_v26 }
 0x11a   : > { %v256_v28 = vpop.f32.mrb[0].mxu0 }
 0x11b   : > { %v257_v29 = vadd.f32 %v348_v27, %v256_v28  ;;  %v402_v30 = vpop.f32.mrb[1].mxu0 }
 0x11d   : > { %v260_v31 = vmul.f32 %v257_v29, %v257_v29 }
 0x11f   : > { %261 = vadd.xlane.f32.xlu0 %v260_v31 }
 0x1ac   : > { %v262_v32 = vpop.xlane.xlu0 %261 }
 0x1ad   : > { %438 = vrsqrt.f32 %v262_v32  ;;  %vm265_vm1 = vcmp.eq.f32.partialorder %v262_v32, inf  ;;  %v268_v35 = vand.u32 2147483648, %v262_v32  ;;  %vm267_vm2 = vcmp.eq.f32.partialorder %v262_v32, 0.0 }
 0x1b7   : > { %v439_v33 = vpop.eup %438 }
 0x1b8   : > { %v264_v34 = vmul.f32 %v439_v33, %v262_v32 }
 0x1ba   : > { %v266_v36 = vsel %vm265_vm1, %v262_v32, %v264_v34 }
 0x1bb   : > { %v269_v37 = vsel %vm267_vm2, %v268_v35, %v266_v36 }
 0x1bc   : > { %v270_v38 = vmax.f32 %v269_v37, 1e-12 }
 0x1be   : > { %440 = vrcp.f32 %v270_v38 }
 0x1c8   : > { %v441_v39 = vpop.eup %440 }
 0x1c9   : > { %v272_v40 = vmul.f32 %v441_v39, %v257_v29 }
 0x1cb   : > { %v273_v41 = vmax.f32 %v272_v40, 0.0 }
 0x1cd   : > { %v274_v42 = vmul.f32 %v273_v41, %v273_v41 }
 0x1cf   : > { %275 = vadd.xlane.f32.xlu0 %v274_v42 }
 0x25c   : > { %v276_v43 = vpop.xlane.xlu0 %275 }
 0x25d   : > { %v277_v44 = vadd.f32 1e-12, %v276_v43 }
 0x25f   : > { %442 = vrsqrt.f32 %v277_v44  ;;  %vm280_vm3 = vcmp.eq.f32.partialorder %v277_v44, inf  ;;  %v283_v47 = vand.u32 2147483648, %v277_v44  ;;  %vm282_vm4 = vcmp.eq.f32.partialorder %v277_v44, 0.0 }
 0x269   : > { %v443_v45 = vpop.eup %442 }
 0x26a   : > { %v279_v46 = vmul.f32 %v443_v45, %v277_v44 }
 0x26c   : > { %v281_v48 = vsel %vm280_vm3, %v277_v44, %v279_v46 }
 0x26d   : > { %v284_v49 = vsel %vm282_vm4, %v283_v47, %v281_v48 }
 0x26e   : > { %444 = vrcp.f32 %v284_v49 }
 0x278   : > { %v445_v50 = vpop.eup %444 }
 0x279   : > { %v286_v51 = vmul.f32 %v445_v50, %v273_v41 }
 0x27b   : > { %287 = vst [vmem:[%s165_s29] sm:$0xff] %v286_v51 }
 0x27c PF: > { %s13_s12 = sadd.s32 1, %s452_s12  }
 0x27d   : > { %p10_p4 = scmp.ge.s32.totalorder %s13_s12, 4  }
 0x27f   :  { %12 = sbr.rel (!%p10_p4) target bundleno = 1 (0x1), region = 62 }

</bundles_post_ra>
